<compile_context>
chip_gen: v7x
topology: tpu7x:2x2x1
jax: 0.10.0
libtpu: 0.0.40
codegen_flags: <defaults>
</compile_context>

<pallas_src>
import numpy as np
import jax
import jax.numpy as jnp
from jax import lax
from jax.experimental import pallas as pl
from jax.experimental.pallas import tpu as pltpu

# ---- module configuration (AttnBottleneck(inplanes=32, planes=8)) ----
N_IMG, H, W = 8, 8, 8
HW = H * W                                 # 64
TOTAL = N_IMG * HW                         # 512 lane positions overall
TILE = 256                                 # lanes per grid step (4 whole images)
GRID = TOTAL // TILE                       # 2 grid steps

PLANES = 8
EXPANSION = 4
INPLANES = PLANES * EXPANSION              # 32 (downsample=None => identity add valid)
WIDTH = int(PLANES * (64 / 64.0)) * 1      # 8
COUT = PLANES * EXPANSION                  # 32
K2 = 9 * WIDTH                             # 72 (im2col contraction dim)
EPS = 1e-5

# packed-parameter row offsets (all multiples of 8 -> aligned f32 sublane slices)
W1_R, W2_R, W3_R = 0, WIDTH, 2 * WIDTH     # 0, 8, 16
WROWS = 2 * WIDTH + COUT                   # 48
WCOLS = K2                                 # 72


def attn_bottleneck_kernel(x_ref, w_ref, b_ref, m_ref, o_ref):
    """One 256-lane (4-image) tile of the bottleneck; everything lives in vregs/VMEM.

    x_ref : (INPLANES, TILE)  channels-first, spatial positions lane-dense (== identity)
    w_ref : (WROWS, WCOLS)    packed conv weights with BN scales folded (f32 storage)
    b_ref : (WROWS, 1)        packed folded BatchNorm shifts
    m_ref : (K2, TILE)        constant 3x3 boundary-validity mask for the roll im2col
    o_ref : (COUT, TILE)      lane-dense output
    """
    x = x_ref[...]                                              # (32, TILE) f32

    # Loop-invariant parameters (constant index_map => resident across grid steps).
    w1 = w_ref[W1_R:W1_R + WIDTH, 0:INPLANES].astype(jnp.bfloat16)   # (8, 32)
    w2 = w_ref[W2_R:W2_R + WIDTH, 0:K2].astype(jnp.bfloat16)         # (8, 72)
    w3 = w_ref[W3_R:W3_R + COUT, 0:WIDTH].astype(jnp.bfloat16)       # (32, 8)
    b1 = b_ref[W1_R:W1_R + WIDTH, :]
    b2 = b_ref[W2_R:W2_R + WIDTH, :]
    b3 = b_ref[W3_R:W3_R + COUT, :]

    # conv1 (1x1) + bn1 + relu : bf16 MXU operands, f32 accumulate + f32 elementwise.
    h1 = jnp.dot(w1, x.astype(jnp.bfloat16), preferred_element_type=jnp.float32)
    h1 = jnp.maximum(h1 + b1, 0.0)                              # (8, TILE)

    # conv2 (3x3, pad=1, stride=1): in-register im2col via XLU lane rolls; boundary
    # handling is a single multiply by the precomputed constant mask.
    taps = []
    for kh in range(3):                                         # static unroll
        for kw in range(3):
            s = (kh - 1) * W + (kw - 1)
            taps.append(h1 if s == 0 else pltpu.roll(h1, shift=(-s) % TILE, axis=1))
    im2col = (jnp.concatenate(taps, axis=0) * m_ref[...]).astype(jnp.bfloat16)
    h2 = jnp.dot(w2, im2col, preferred_element_type=jnp.float32)
    h2 = jnp.maximum(h2 + b2, 0.0)                              # (8, TILE)

    # conv3 (1x1) + bn3 + residual + final relu ; lane-dense unmasked store.
    h3 = jnp.dot(w3, h2.astype(jnp.bfloat16), preferred_element_type=jnp.float32) + b3
    o_ref[...] = jnp.maximum(h3 + x, 0.0).astype(o_ref.dtype)


def attn_bottleneck_native(x_cp, w_packed, b_packed, mask):
    """Kernel-native entry: x_cp is (INPLANES, N*H*W) -> (COUT, N*H*W)."""
    return pl.pallas_call(
        attn_bottleneck_kernel,
        out_shape=jax.ShapeDtypeStruct((COUT, TOTAL), x_cp.dtype),
        grid_spec=pltpu.PrefetchScalarGridSpec(
            num_scalar_prefetch=0,
            grid=(GRID,),
            in_specs=[
                pl.BlockSpec((INPLANES, TILE), lambda i: (0, i)),   # activations
                pl.BlockSpec((WROWS, WCOLS), lambda i: (0, 0)),     # weights (resident)
                pl.BlockSpec((WROWS, 1), lambda i: (0, 0)),         # biases  (resident)
                pl.BlockSpec((K2, TILE), lambda i: (0, 0)),         # mask    (resident)
            ],
            out_specs=pl.BlockSpec((COUT, TILE), lambda i: (0, i)),
        ),
        compiler_params=pltpu.CompilerParams(
            dimension_semantics=("parallel",),                      # v7x: 2 TCs
        ),
    )(x_cp, w_packed, b_packed, mask)


# ---------------- pure-JAX reference (NCHW, lax.conv) ----------------
def reference(x, w1_oihw, w2_oihw, w3_oihw, bn):
    def apply_bn(h, gamma, beta, mean, var):
        s = gamma / jnp.sqrt(var + EPS)
        return h * s[None, :, None, None] + (beta - mean * s)[None, :, None, None]

    dn = ('NCHW', 'OIHW', 'NCHW')
    h = lax.conv_general_dilated(x, w1_oihw, (1, 1), 'VALID', dimension_numbers=dn)
    h = jax.nn.relu(apply_bn(h, *bn[0]))
    h = lax.conv_general_dilated(h, w2_oihw, (1, 1), ((1, 1), (1, 1)),
                                 dimension_numbers=dn)
    h = jax.nn.relu(apply_bn(h, *bn[1]))
    h = lax.conv_general_dilated(h, w3_oihw, (1, 1), 'VALID', dimension_numbers=dn)
    h = apply_bn(h, *bn[2])
    return jax.nn.relu(h + x)


if __name__ == "__main__":
    key = jax.random.PRNGKey(0)
    keys = jax.random.split(key, 16)

    # PyTorch-shaped (OIHW) conv weights, deterministic
    w1_oihw = 0.1 * jax.random.normal(keys[0], (WIDTH, INPLANES, 1, 1), jnp.float32)
    w2_oihw = 0.1 * jax.random.normal(keys[1], (WIDTH, WIDTH, 3, 3), jnp.float32)
    w3_oihw = 0.1 * jax.random.normal(keys[2], (COUT, WIDTH, 1, 1), jnp.float32)

    def bn_params(kg, kb, km, kv, c):
        gamma = 1.0 + 0.1 * jax.random.normal(kg, (c,), jnp.float32)
        beta = 0.1 * jax.random.normal(kb, (c,), jnp.float32)
        mean = 0.1 * jax.random.normal(km, (c,), jnp.float32)
        var = jax.random.uniform(kv, (c,), jnp.float32, 0.5, 1.5)
        return gamma, beta, mean, var

    bn1 = bn_params(keys[3], keys[4], keys[5], keys[6], WIDTH)
    bn2 = bn_params(keys[7], keys[8], keys[9], keys[10], WIDTH)
    bn3 = bn_params(keys[11], keys[12], keys[13], keys[14], COUT)

    def fold(gamma, beta, mean, var):
        s = gamma / jnp.sqrt(var + EPS)
        return s, beta - mean * s

    s1, c1 = fold(*bn1)
    s2, c2 = fold(*bn2)
    s3, c3 = fold(*bn3)

    # BN scales folded into conv weights (per-output-channel row scaling).
    w1f = w1_oihw[:, :, 0, 0] * s1[:, None]                              # (8, 32)
    w2f = jnp.concatenate([w2_oihw[:, :, kh, kw]
                           for kh in range(3) for kw in range(3)],
                          axis=1) * s2[:, None]                          # (8, 72)
    w3f = w3_oihw[:, :, 0, 0] * s3[:, None]                              # (32, 8)

    # Consolidated parameter buffers: one weight slab, one bias slab.
    w_packed = jnp.zeros((WROWS, WCOLS), jnp.float32)
    w_packed = w_packed.at[W1_R:W1_R + WIDTH, 0:INPLANES].set(w1f)
    w_packed = w_packed.at[W2_R:W2_R + WIDTH, 0:K2].set(w2f)
    w_packed = w_packed.at[W3_R:W3_R + COUT, 0:WIDTH].set(w3f)
    b_packed = jnp.concatenate([c1, c2, c3]).reshape(WROWS, 1)

    # Precomputed constant (72, TILE) boundary-validity mask for the roll im2col.
    # Valid only when a tile spans whole images (TILE is a multiple of H*W).
    pos = np.arange(TILE)
    hh = (pos // W) % H
    ww = pos % W
    rows = []
    for kh in range(3):
        for kw in range(3):
            dh, dw = kh - 1, kw - 1
            v = ((hh + dh >= 0) & (hh + dh < H) & (ww + dw >= 0) & (ww + dw < W))
            rows.append(np.broadcast_to(v.astype(np.float32), (WIDTH, TILE)))
    mask = jnp.asarray(np.concatenate(rows, axis=0))                     # (72, TILE)

    # Kernel-native input layout (C, N*H*W): a real network keeps consecutive blocks
    # in this layout, so no transposes sit on the kernel path.
    x_cp = jax.random.normal(keys[15], (INPLANES, TOTAL), jnp.float32)

    out_cp = attn_bottleneck_native(x_cp, w_packed, b_packed, mask)
    out_cp = jax.block_until_ready(out_cp)

    # Reference check only: convert to/from NCHW outside the kernel path.
    x_nchw = jnp.transpose(x_cp.reshape(INPLANES, N_IMG, H, W), (1, 0, 2, 3))
    ref_nchw = reference(x_nchw, w1_oihw, w2_oihw, w3_oihw, (bn1, bn2, bn3))
    ref_cp = jnp.transpose(ref_nchw, (1, 0, 2, 3)).reshape(COUT, TOTAL)

    assert out_cp.shape == (COUT, TOTAL)
    err = jnp.max(jnp.abs(out_cp - ref_cp))
    # bf16 MXU operands with f32 accumulation => looser tolerance than pure f32.
    assert jnp.allclose(out_cp, ref_cp, atol=5e-2, rtol=5e-2), f"max abs err {err}"
    print("KERNEL_OK")
</pallas_src>

<mosaic_0001>
module attributes {stable_mosaic.version = 11 : i64} {
  func.func @attn_bottleneck_kernel(%arg0: i32, %arg1: memref<32x256xf32, #tpu.memory_space<vmem>>, %arg2: memref<48x72xf32, #tpu.memory_space<vmem>>, %arg3: memref<48x1xf32, #tpu.memory_space<vmem>>, %arg4: memref<72x256xf32, #tpu.memory_space<vmem>>, %arg5: memref<32x256xf32, #tpu.memory_space<vmem>>) attributes {dimension_semantics = [#tpu.dimension_semantics<parallel>], iteration_bounds = array<i64: 2>, scalar_prefetch = 0 : i64, scratch_operands = 0 : i64, tpu.core_type = #tpu.core_type<tc>, window_params = [{transform_indices = @transform_0, window_bounds = array<i64: 32, 256>}, {pipeline_mode = #tpu.pipeline_mode<synchronous>, transform_indices = @transform_1, window_bounds = array<i64: 48, 72>}, {pipeline_mode = #tpu.pipeline_mode<synchronous>, transform_indices = @transform_2, window_bounds = array<i64: 48, 1>}, {pipeline_mode = #tpu.pipeline_mode<synchronous>, transform_indices = @transform_3, window_bounds = array<i64: 72, 256>}, {transform_indices = @transform_4, window_bounds = array<i64: 32, 256>}]} {
    %c0 = arith.constant 0 : index
    %c0_0 = arith.constant 0 : index
    %0 = vector.load %arg1[%c0, %c0_0] : memref<32x256xf32, #tpu.memory_space<vmem>>, vector<32x256xf32>
    %c0_1 = arith.constant 0 : index
    %c0_2 = arith.constant 0 : index
    %1 = vector.load %arg2[%c0_1, %c0_2] : memref<48x72xf32, #tpu.memory_space<vmem>>, vector<8x32xf32>
    %2 = arith.truncf %1 : vector<8x32xf32> to vector<8x32xbf16>
    %c8 = arith.constant 8 : index
    %c0_3 = arith.constant 0 : index
    %3 = vector.load %arg2[%c8, %c0_3] : memref<48x72xf32, #tpu.memory_space<vmem>>, vector<8x72xf32>
    %4 = arith.truncf %3 : vector<8x72xf32> to vector<8x72xbf16>
    %c16 = arith.constant 16 : index
    %c0_4 = arith.constant 0 : index
    %5 = vector.load %arg2[%c16, %c0_4] : memref<48x72xf32, #tpu.memory_space<vmem>>, vector<32x8xf32>
    %6 = arith.truncf %5 : vector<32x8xf32> to vector<32x8xbf16>
    %c0_5 = arith.constant 0 : index
    %c0_6 = arith.constant 0 : index
    %7 = vector.load %arg3[%c0_5, %c0_6] : memref<48x1xf32, #tpu.memory_space<vmem>>, vector<8x1xf32>
    %c8_7 = arith.constant 8 : index
    %c0_8 = arith.constant 0 : index
    %8 = vector.load %arg3[%c8_7, %c0_8] : memref<48x1xf32, #tpu.memory_space<vmem>>, vector<8x1xf32>
    %c16_9 = arith.constant 16 : index
    %c0_10 = arith.constant 0 : index
    %9 = vector.load %arg3[%c16_9, %c0_10] : memref<48x1xf32, #tpu.memory_space<vmem>>, vector<32x1xf32>
    %10 = arith.truncf %0 : vector<32x256xf32> to vector<32x256xbf16>
    %cst = arith.constant dense<0.000000e+00> : vector<8x256xf32>
    %11 = tpu.matmul %2, %10, %cst {dimension_numbers = #tpu.dot_dimension_numbers<[1], [0], [0], [1], [0, 0, 1, 1], [], []>} : vector<8x32xbf16>, vector<32x256xbf16>, vector<8x256xf32> -> vector<8x256xf32>
    %12 = vector.broadcast %7 : vector<8x1xf32> to vector<8x256xf32>
    %13 = arith.addf %11, %12 : vector<8x256xf32>
    %cst_11 = arith.constant 0.000000e+00 : f32
    %14 = vector.broadcast %cst_11 : f32 to vector<8x256xf32>
    %15 = arith.maximumf %13, %14 : vector<8x256xf32>
    %c9_i32 = arith.constant 9 : i32
    %16 = tpu.dynamic_rotate %15 by %c9_i32 dim 1 : vector<8x256xf32>, i32 -> vector<8x256xf32>
    %c8_i32 = arith.constant 8 : i32
    %17 = tpu.dynamic_rotate %15 by %c8_i32 dim 1 : vector<8x256xf32>, i32 -> vector<8x256xf32>
    %c7_i32 = arith.constant 7 : i32
    %18 = tpu.dynamic_rotate %15 by %c7_i32 dim 1 : vector<8x256xf32>, i32 -> vector<8x256xf32>
    %c1_i32 = arith.constant 1 : i32
    %19 = tpu.dynamic_rotate %15 by %c1_i32 dim 1 : vector<8x256xf32>, i32 -> vector<8x256xf32>
    %c255_i32 = arith.constant 255 : i32
    %20 = tpu.dynamic_rotate %15 by %c255_i32 dim 1 : vector<8x256xf32>, i32 -> vector<8x256xf32>
    %c249_i32 = arith.constant 249 : i32
    %21 = tpu.dynamic_rotate %15 by %c249_i32 dim 1 : vector<8x256xf32>, i32 -> vector<8x256xf32>
    %c248_i32 = arith.constant 248 : i32
    %22 = tpu.dynamic_rotate %15 by %c248_i32 dim 1 : vector<8x256xf32>, i32 -> vector<8x256xf32>
    %c247_i32 = arith.constant 247 : i32
    %23 = tpu.dynamic_rotate %15 by %c247_i32 dim 1 : vector<8x256xf32>, i32 -> vector<8x256xf32>
    %24 = tpu.concatenate %16, %17, %18, %19, %15, %20, %21, %22, %23 in 0 : vector<8x256xf32>, vector<8x256xf32>, vector<8x256xf32>, vector<8x256xf32>, vector<8x256xf32>, vector<8x256xf32>, vector<8x256xf32>, vector<8x256xf32>, vector<8x256xf32> -> vector<72x256xf32>
    %c0_12 = arith.constant 0 : index
    %c0_13 = arith.constant 0 : index
    %25 = vector.load %arg4[%c0_12, %c0_13] : memref<72x256xf32, #tpu.memory_space<vmem>>, vector<72x256xf32>
    %26 = arith.mulf %24, %25 : vector<72x256xf32>
    %27 = arith.truncf %26 : vector<72x256xf32> to vector<72x256xbf16>
    %cst_14 = arith.constant dense<0.000000e+00> : vector<8x256xf32>
    %28 = tpu.matmul %4, %27, %cst_14 {dimension_numbers = #tpu.dot_dimension_numbers<[1], [0], [0], [1], [0, 0, 1, 1], [], []>} : vector<8x72xbf16>, vector<72x256xbf16>, vector<8x256xf32> -> vector<8x256xf32>
    %29 = vector.broadcast %8 : vector<8x1xf32> to vector<8x256xf32>
    %30 = arith.addf %28, %29 : vector<8x256xf32>
    %cst_15 = arith.constant 0.000000e+00 : f32
    %31 = vector.broadcast %cst_15 : f32 to vector<8x256xf32>
    %32 = arith.maximumf %30, %31 : vector<8x256xf32>
    %33 = arith.truncf %32 : vector<8x256xf32> to vector<8x256xbf16>
    %cst_16 = arith.constant dense<0.000000e+00> : vector<32x256xf32>
    %34 = tpu.matmul %6, %33, %cst_16 {dimension_numbers = #tpu.dot_dimension_numbers<[1], [0], [0], [1], [0, 0, 1, 1], [], []>} : vector<32x8xbf16>, vector<8x256xbf16>, vector<32x256xf32> -> vector<32x256xf32>
    %35 = vector.broadcast %9 : vector<32x1xf32> to vector<32x256xf32>
    %36 = arith.addf %34, %35 : vector<32x256xf32>
    %37 = arith.addf %36, %0 : vector<32x256xf32>
    %cst_17 = arith.constant 0.000000e+00 : f32
    %38 = vector.broadcast %cst_17 : f32 to vector<32x256xf32>
    %39 = arith.maximumf %37, %38 : vector<32x256xf32>
    %c0_18 = arith.constant 0 : index
    %c0_19 = arith.constant 0 : index
    %40 = vector.load %arg5[%c0_18, %c0_19] : memref<32x256xf32, #tpu.memory_space<vmem>>, vector<32x256xf32>
    tpu.vector_store %arg5[%c0_18, %c0_19], %39 {strides = array<i32>} : memref<32x256xf32, #tpu.memory_space<vmem>>, vector<32x256xf32>,
    return
  }
  func.func @transform_0(%arg0: i32) -> (i32, i32) {
    %c0_i32 = arith.constant 0 : i32
    %c0_i32_0 = arith.constant 0 : i32
    return %c0_i32, %arg0 : i32, i32
  }
  func.func @transform_1(%arg0: i32) -> (i32, i32) {
    %c0_i32 = arith.constant 0 : i32
    %c0_i32_0 = arith.constant 0 : i32
    %c0_i32_1 = arith.constant 0 : i32
    return %c0_i32, %c0_i32_0 : i32, i32
  }
  func.func @transform_2(%arg0: i32) -> (i32, i32) {
    %c0_i32 = arith.constant 0 : i32
    %c0_i32_0 = arith.constant 0 : i32
    %c0_i32_1 = arith.constant 0 : i32
    return %c0_i32, %c0_i32_0 : i32, i32
  }
  func.func @transform_3(%arg0: i32) -> (i32, i32) {
    %c0_i32 = arith.constant 0 : i32
    %c0_i32_0 = arith.constant 0 : i32
    %c0_i32_1 = arith.constant 0 : i32
    return %c0_i32, %c0_i32_0 : i32, i32
  }
  func.func @transform_4(%arg0: i32) -> (i32, i32) {
    %c0_i32 = arith.constant 0 : i32
    %c0_i32_0 = arith.constant 0 : i32
    return %c0_i32, %arg0 : i32, i32
  }
}

</mosaic_0001>

<bundles_post_ra>
// kernel: tpu_custom_call.1
= control target key start
LH: loop header
LB: loop body
LE: loop exit
PB: predicated region body
PF: predicated region fallthrough
CT: control target
= control target key end

     0   :  { %9 = vsyncpa [#allocation3], 0  ;;  %s1299_s0 = inlined_call_operand.hbm [shape: f32[32,512], index: 0, kind: input, shape index: {}]   ;;  %s1300_s1 = inlined_call_operand.vmem [shape: f32[48,72], index: 1, kind: input, shape index: {}]   ;;  %s1301_s2 = inlined_call_operand.vmem [shape: f32[48,1], index: 2, kind: input, shape index: {}]   ;;  %s1302_s3 = inlined_call_operand.hbm [shape: f32[72,256], index: 3, kind: input, shape index: {}]   ;;  %s1303_s4 = inlined_call_operand.hbm [shape: f32[32,512], index: 4, kind: output, shape index: {}]  }
   0x1   :  { %11 = vsyncpa [#allocation3 + $0x1], 0 }
   0x2   :  { %12 = vsyncpa [#allocation6], 0 }
   0x3   :  { %13 = vsyncpa [#allocation4], 0 }
   0x4   :  { %15 = vsyncpa [#allocation4 + $0x1], 0  ;;  %s957_s15 = smov 0   ;;  %s959_s16 = smov 0  }
   0x5   :  { %s961_s17 = smov 0   ;;  %s963_s18 = smov 0  }
   0x6 LB: > { %s978_s19 = sadd.s32 4294967295, %s912_s18   ;;  %s686_s20 = sadd.s32 4294967294, %s912_s18   ;;  %s912_s18 = sphi %s963_s18, %s1327_s18   ;;  %s908_s17 = sphi %s961_s17, %s1326_s17   ;;  %s904_s16 = sphi %s959_s16, %s1325_s16   ;;  %s900_s15 = sphi %s957_s15, %s1324_s15  }
   0x7   : > { %s982_s21 = sadd.s32 1, %s912_s18   ;;  %s28_s22 = sadd.s32 1, %s908_s17 }
   0x8   : > { %s25_s23 = ssub.s32 %s912_s18, %s982_s21  ;;  %p35_p0 = scmp.ne.s32.totalorder %s908_s17, %s904_s16 }
   0x9   : > { %p26_p1 = scmp.eq.s32.totalorder %s25_s23, 0  ;;  %p36_p2 = scmp.eq.s32.totalorder %s912_s18, 0 }
   0xa   : > { %p41_p3 = scmp.ne.s32.totalorder %s904_s16, %s900_s15  ;;  %p1304_p4 = scmp.eq.s32.totalorder %s978_s19, 0 }
   0xb   : > { %s994_s24 = scalar_select %p26_p1, %s908_s17, %s28_s22  }
   0xc   : > { %p996_p5 = por %p36_p2, %p35_p0  ;;  %p1002_p6 = por %p1304_p4, %p41_p3 }
   0xd   : > { %p128_p7 = scmp.eq.s32.totalorder %s978_s19, 1  ;;  %p134_p8 = scmp.eq.s32.totalorder %s686_s20, 1 }
   0xe   : > { %s1308_s25 = scalar_select %p996_p5, 1, 0 }
   0xf   : > { %s1309_s26 = scalar_select %p1002_p6, 1, 0 }
  0x10   : > { %p687_p9 = scmp.ge.s32.totalorder %s912_s18, 1  ;;  %p141_p10 = scmp.lt.s32.totalorder %s912_s18, 3 }
  0x11   : > { %p1009_p11 = por %p128_p7, %p35_p0  ;;  %p1013_p12 = por %p134_p8, %p41_p3 }
  0x12   : > { %p1017_p13 = pnand %p687_p9, %p141_p10  ;;  %s914_s30 = smov [#allocation5]  }
  0x13   : > { %s1310_s27 = scalar_select %p1009_p11, 1, 0 }
  0x14   : > { %s1311_s28 = scalar_select %p1013_p12, 1, 0 }
  0x15   : > { %s1312_s29 = scalar_select %p1017_p13, 1, 0 }
  0x16   : > { %p718_p1 = pneg %p1017_p13  ;;  %s159_s5 = sshll.u32 %s914_s30, 4  ;;  %s160_s5 = int_to_ptr.vmem [resolvable:$true] %s159_s5 }
  0x17   : > { %s173_s7 = sand.u32 1, %s908_s17   ;;  %s784_s10 = scalar_lea.hbm %s1302_s3, 2304 }
  0x18   : > { %p1025_p2 = pnand %p718_p1, %p1304_p4  ;;  %p785_p7 = scmp.ne.s32.totalorder %s1302_s3, %s784_s10 }
  0x19   : > { %p791_p1 = scmp.lt.u32.totalorder %s784_s10, %s1302_s3 }
  0x1a   : > { %p786_p8 = pneg %p1025_p2 }
  0x1c   : > { %p787_p9 = pnand %p786_p8, %p785_p7 }
  0x1e   : > { %p788_p10 = pneg %p787_p9 }
  0x20   : > { %p793_p4 = pnand %p791_p1, %p788_p10 }
  0x22   : > { %796 = shalt.err (!%p793_p4)
}
  0x23   : > { %s797_s20 = scalar_lea.vmem %s160_s5, 2304  ;;  %p805_p11 = scmp.lt.s32.totalorder %s160_s5, %s160_s5 }
  0x24   : > { %p798_p0 = scmp.ne.s32.totalorder %s160_s5, %s797_s20  ;;  %p806_p6 = scmp.lt.s32.totalorder %s797_s20, %s797_s20 }
  0x26   : > { %p800_p3 = pnand %p798_p0, %p786_p8  ;;  %p807_p13 = por %p806_p6, %p805_p11 }
  0x28   : > { %p801_p12 = pneg %p800_p3 }
  0x2a   : > { %p808_p5 = pnand %p807_p13, %p801_p12 }
  0x2c   : > { %811 = shalt.err (!%p808_p5)
}
  0x2d   : > { %s915_s22 = smov 256   ;;  %s916_s23 = smov 16  }
  0x2e   : > { %721 = dma.hbm_to_vmem [thread:$0]  (!%p1025_p2), %s1302_s3, 2304, %s160_s5, [#allocation6], %s915_s22, %s915_s22, %s916_s23  }
  0x2f   : > { %p1314_p4 = scmp.ne.s32.totalorder %s1308_s25, 0  ;;  %p1315_p0 = scmp.lt.s32.totalorder %s912_s18, 2 }
  0x30   : > { %s690_s10 = sshll.u32 %s173_s7, 6  ;;  %s708_s11 = sshll.u32 %s912_s18, 8 }
  0x31   : > { %p1055_p3 = pnand %p1315_p0, %p1314_p4  ;;  %s1063_s6 = scalar_lea.hbm %s1299_s0, %s708_s11 }
  0x32   : > { %s177_s5 = scalar_lea.vmem [#allocation2], %s690_s10  ;;  %s1067_s14 = scalar_lea.sflag [#allocation3], %s173_s7 }
  0x33   : > { %s184_s25 = sshll.u32 %s177_s5, 4  ;;  %s812_s20 = scalar_lea.hbm %s1063_s6, 1024  ;;  %s1065_s25 = int_to_ptr.vmem [resolvable:$true] %s184_s25 }
  0x34   : > { %p813_p5 = scmp.ne.s32.totalorder %s1063_s6, %s812_s20  ;;  %p814_p6 = pneg %p1055_p3 }
  0x35   : > { %s817_s11 = scalar_lea.hbm %s1299_s0, 2048  ;;  %p818_p13 = scmp.lt.u32.totalorder %s1063_s6, %s1299_s0 }
  0x36   : > { %p815_p11 = pnand %p814_p6, %p813_p5  ;;  %p819_p2 = scmp.lt.u32.totalorder %s817_s11, %s812_s20 }
  0x37   : > { %p821_p8 = scmp.lt.u32.totalorder %s812_s20, %s1063_s6 }
  0x38   : > { %p816_p12 = pneg %p815_p11  ;;  %p820_p7 = por %p819_p2, %p818_p13 }
  0x3a   : > { %p822_p9 = por %p821_p8, %p820_p7 }
  0x3c   : > { %p823_p10 = pnand %p822_p9, %p816_p12 }
  0x3e   : > { %826 = shalt.err (!%p823_p10)
}
  0x3f   : > { %s827_s7 = scalar_lea.vmem %s1065_s25, 1024  ;;  %s917_s10 = smov [#allocation2]  }
  0x40   : > { %p828_p1 = scmp.ne.s32.totalorder %s1065_s25, %s827_s7  ;;  %s832_s5 = sshll.u32 %s917_s10, 4  ;;  %s833_s5 = int_to_ptr.vmem [resolvable:$false] %s832_s5 }
  0x41   : > { %s834_s30 = scalar_lea.vmem %s833_s5, 2048  ;;  %p835_p5 = scmp.lt.s32.totalorder %s1065_s25, %s833_s5 }
  0x42   : > { %p830_p4 = pnand %p828_p1, %p814_p6  ;;  %p836_p11 = scmp.lt.s32.totalorder %s834_s30, %s827_s7 }
  0x44   : > { %p831_p0 = pneg %p830_p4  ;;  %p837_p13 = por %p836_p11, %p835_p5 }
  0x46   : > { %p838_p2 = pnand %p837_p13, %p831_p0 }
  0x48   : > { %841 = shalt.err (!%p838_p2)
}
  0x49   : > { %s918_s20 = smov 512   ;;  %p1317_p6 = scmp.ne.s32.totalorder %s1312_s29, 0 }
  0x4a   : > { %725 = dma.hbm_to_vmem [thread:$0]  (!%p1055_p3), %s1063_s6, 1024, %s1065_s25, %s1067_s14, %s918_s20, %s915_s22, %s916_s23  }
  0x4b   : > { %196 = sbr.rel (%p1317_p6) target bundleno = 933 (0x3a5), region = 36  ;;  %s1100_s8 = sand.u32 (!%p1317_p6), 1, %s904_s16  }
  0x4c   : > { %s694_s11 = sshll.u32 (!%p1317_p6), %s1100_s8, 6  ;;  %s199_s12 = scalar_lea.sflag (!%p1317_p6), [#allocation3], %s1100_s8 }
  0x4d   : > { %s202_s9 = scalar_lea.vmem (!%p1317_p6), [#allocation2], %s694_s11  ;;  %p1318_p12 = scmp.ne.s32.totalorder (!%p1317_p6), %s1309_s26, 0 }
  0x52   : > { %887 = dma.done.wait (%p1318_p12), %s199_s12, 1024  }
  0x53   : > { %889 = vsyncadd (%p1318_p12), %s199_s12, 4294966272  ;;  %p1319_p3 = scmp.eq.s32.totalorder %s978_s19, 0 }
  0x55   : > { %891 = dma.done.wait (%p1319_p3), [#allocation6], 2304   ;;  %p1320_p7 = pmov %p1319_p3 }
  0x56   : > { %v919_v0 = vmov 0   ;;  %v1118_v1 = vld [vmem:[%s202_s9 + $0x8] sm:$0xff]  ;;  %v1120_v2 = vld [vmem:[%s202_s9 + $0x18] sm:$0xff]  ;;  %v1122_v3 = vld [vmem:[%s202_s9] sm:$0xff]  ;;  %vm267_vm0 = vcmask 261120   ;;  %s920_s6 = smov 8   ;;  %v318_v30 = vlaneseq }
  0x57   : > { %893 = vsyncadd (%p1320_p7), [#allocation6], 4294964992  ;;  %303 = vmatprep.mubr.bf16.mxu0 %v919_v0  ;;  %782 = vset.pattern.permute.xlu0 %v919_v0  ;;  %v259_v4 = vpack.c.bf16 %v1120_v2, %v1118_v1  ;;  %v1126_v5 = vld [vmem:[%s202_s9 + $0x10] sm:$0xff]  ;;  %v1128_v6 = vld [vmem:[%s202_s9 + $0x28] sm:$0xff]  ;;  %s921_s25 = smov 9   ;;  %s922_s14 = smov 7  }
  0x58   : > { %466 = vmatprep.mubr.bf16.mxu1 %v919_v0  ;;  %783 = vset.pattern.permute.xlu1 %v919_v0  ;;  %v1130_v7 = vld [vmem:[%s202_s9 + $0x38] sm:$0xff]  ;;  %v258_v8 = vpack.c.bf16 %v1126_v5, %v1122_v3  ;;  %v1136_v10 = vld [vmem:[%s202_s9 + $0x20] sm:$0xff]  ;;  %v1138_v11 = vld [vmem:[%s202_s9 + $0x30] sm:$0xff]  ;;  %s923_s13 = smov 1   ;;  %s924_s7 = smov 127   ;;  %v1184_v33 = vand.u32 127, %v318_v30 }
  0x59   : > { %v261_v9 = vpack.c.bf16 %v1130_v7, %v1128_v6  ;;  %271 = vmatprep.subr.bf16.mxu0 %v259_v4  ;;  %v252_v12 = vld [vmem:[%s1301_s2] sm:$0xff]  ;;  %v260_v13 = vpack.c.bf16 %v1138_v11, %v1136_v10  ;;  %s925_s10 = smov 121   ;;  %s926_s5 = smov 120   ;;  %v254_v25 = vld [vmem:[%s1301_s2 + $0x10] sm:$0xff]  ;;  %v253_v27 = vld [vmem:[%s1301_s2 + $0x8] sm:$0xff]  ;;  %vm427_vm9 = vcmask 1043456  }
  0x5a   : > { %272 = vmatpush1.bf16.msra.mxu0 %v258_v8  ;;  %v242_v14 = vld [vmem:[%s1300_s1] sm:$0xff]  ;;  %264 = vperm.xlu0 %782, %v252_v12   ;;  %s927_s30 = smov 119   ;;  %v255_v28 = vld [vmem:[%s1301_s2 + $0x18] sm:$0xff]  ;;  %v257_v29 = vld [vmem:[%s1301_s2 + $0x28] sm:$0xff]  ;;  %vm327_vm1 = vcmp.lt.s32.totalorder %v1184_v33, 8  ;;  %vm334_vm2 = vcmp.lt.s32.totalorder %v1184_v33, 7 }
  0x5b   : > { %273 = vmatprep.subr.bf16.mxu0 %v261_v9  ;;  %v243_v15 = vpack.c.bf16 %v242_v14, %v242_v14  ;;  %v256_v26 = vld [vmem:[%s1301_s2 + $0x20] sm:$0xff]  ;;  %v374_v38 = vld [vmem:[#allocation5 + $0x10] sm:$0xff]  ;;  %v375_v41 = vld [vmem:[#allocation5 + $0x18] sm:$0xff]  ;;  %vm320_vm3 = vcmp.lt.s32.totalorder %v1184_v33, 9  ;;  %vm341_vm4 = vcmp.lt.s32.totalorder %v1184_v33, 1  ;;  %vm348_vm5 = vcmp.lt.s32.totalorder %v1184_v33, 127 }
  0x5c   : > { %v372_v42 = vld [vmem:[#allocation5] sm:$0xff]  ;;  %v379_v43 = vld [vmem:[#allocation5 + $0x38] sm:$0xff]  ;;  %v373_v44 = vld [vmem:[#allocation5 + $0x8] sm:$0xff]  ;;  %vm355_vm6 = vcmp.lt.s32.totalorder %v1184_v33, 121  ;;  %vm362_vm7 = vcmp.lt.s32.totalorder %v1184_v33, 120  ;;  %vm369_vm8 = vcmp.lt.s32.totalorder %v1184_v33, 119 }
  0x5d   : > { %v377_v49 = vld [vmem:[#allocation5 + $0x28] sm:$0xff]  ;;  %v378_v55 = vld [vmem:[#allocation5 + $0x30] sm:$0xff]  ;;  %v383_v59 = vld [vmem:[#allocation5 + $0x58] sm:$0xff]  ;;  %vm423_vm10 = vcmask 588800   ;;  %vm499_vm11 = vcmask 64512   ;;  %s1234_s22 = scalar_lea.vmem [#allocation7], %s694_s11 }
  0x5e   : > { %274 = vmatpush1.bf16.msra.mxu0 %v260_v13  ;;  %v376_v60 = vld [vmem:[#allocation5 + $0x20] sm:$0xff]  ;;  %v381_v14 = vld [vmem:[#allocation5 + $0x48] sm:$0xff]  ;;  %s603_s11 = sshll.u32 %s1234_s22, 4  ;;  %s709_s23 = sshll.u32 %s978_s19, 8  ;;  %s1245_s11 = int_to_ptr.vmem [resolvable:$true] %s603_s11 }
  0x5f   : > { %v385_v30 = vld [vmem:[#allocation5 + $0x68] sm:$0xff]  ;;  %s590_s19 = scalar_lea.sflag [#allocation4], %s1100_s8  ;;  %p1321_p9 = scmp.ne.s32.totalorder %s1310_s27, 0 }
  0x60   : > { %v244_v33 = vld [vmem:[%s1300_s1 + $0x8] sm:$0xff] }
  0x61   : > { %697 = vmatmul.mubr.msk.bf16.vlgmr.msra.gmra.mrb[0].mxu0 %vm267_vm0, %v243_v15  ;;  %v382_v15 = vld [vmem:[#allocation5 + $0x50] sm:$0xff] }
  0x62   : > { %544 = vmatprep.mubr.bf16.mxu0 %v919_v0 }
  0xd9   : > { %v265_v16 = vpop.permute.xlu0 %264 }
 0x134   : > { %v305_v17 = vpop.f32.mrb[0].mxu0 }
 0x135   : > { %v306_v18 = vadd.f32 %v305_v17, %v265_v16  ;;  %v307_v19 = vpop.f32.mrb[1].mxu0 }
 0x136   : > { %v309_v20 = vpop.f32.mrb[2].mxu0  ;;  %v308_v22 = vadd.f32 %v307_v19, %v265_v16 }
 0x137   : > { %v1149_v21 = vmax.f32 %v306_v18, 0.0  ;;  %v310_v23 = vpop.f32.mrb[3].mxu0 }
 0x138   : > { %v1153_v24 = vmax.f32 %v308_v22, 0.0 }
 0x139   : > { %323 = vrot.lane.b32.xlu1 %v1149_v21, %s920_s6  ;;  %314 = vrot.lane.b32.xlu0 %v1149_v21, %s921_s25 }
 0x13a   : > { %v399_v23 = vmul.f32 %v381_v14, %v1153_v24  ;;  %v247_v14 = vld [vmem:[%s1300_s1 + $0x18] sm:$0xff] }
 0x13d   : > { %330 = vrot.lane.b32.xlu1 %v1149_v21, %s922_s14  ;;  %325 = vrot.lane.b32.xlu0 %v1153_v24, %s920_s6 }
 0x141   : > { %337 = vrot.lane.b32.xlu1 %v1149_v21, %s923_s13  ;;  %332 = vrot.lane.b32.xlu0 %v1153_v24, %s922_s14  ;;  %s1252_s14 = scalar_lea.hbm %s1303_s4, %s709_s23 }
 0x145   : > { %316 = vrot.lane.b32.xlu1 %v1153_v24, %s921_s25  ;;  %339 = vrot.lane.b32.xlu0 %v1153_v24, %s923_s13  ;;  %s842_s13 = scalar_lea.vmem %s1245_s11, 1024 }
 0x146   : > { %p843_p8 = scmp.ne.s32.totalorder %s1245_s11, %s842_s13 }
 0x148   : > { %p844_p10 = pnand %p843_p8, %p1321_p9 }
 0x149   : > { %344 = vrot.lane.b32.xlu1 %v1149_v21, %s924_s7  ;;  %346 = vrot.lane.b32.xlu0 %v1153_v24, %s924_s7  ;;  %s928_s7 = smov [#allocation7]  }
 0x14a   : > { %p845_p1 = pneg %p844_p10 }
 0x14d   : > { %351 = vrot.lane.b32.xlu1 %v1149_v21, %s925_s10  ;;  %353 = vrot.lane.b32.xlu0 %v1153_v24, %s925_s10  ;;  %s846_s10 = sshll.u32 %s928_s7, 4  ;;  %s847_s10 = int_to_ptr.vmem [resolvable:$false] %s846_s10 }
 0x14e   : > { %p849_p4 = scmp.lt.s32.totalorder %s1245_s11, %s847_s10 }
 0x151   : > { %358 = vrot.lane.b32.xlu1 %v1149_v21, %s926_s5  ;;  %360 = vrot.lane.b32.xlu0 %v1153_v24, %s926_s5  ;;  %s848_s5 = scalar_lea.vmem %s847_s10, 2048 }
 0x152   : > { %p850_p0 = scmp.lt.s32.totalorder %s848_s5, %s842_s13 }
 0x154   : > { %p851_p5 = por %p850_p0, %p849_p4 }
 0x155   : > { %365 = vrot.lane.b32.xlu1 %v1149_v21, %s927_s30  ;;  %367 = vrot.lane.b32.xlu0 %v1153_v24, %s927_s30 }
 0x156   : > { %p852_p11 = pnand %p851_p5, %p845_p1 }
 0x159   : > { %481 = vperm.xlu0 %782, %v254_v25   ;;  %420 = vperm.xlu1 %783, %v253_v27   ;;  %v380_v25 = vld [vmem:[#allocation5 + $0x40] sm:$0xff] }
 0x15d   : > { %491 = vperm.xlu0 %782, %v256_v26   ;;  %486 = vperm.xlu1 %783, %v255_v28   ;;  %v384_v28 = vld [vmem:[#allocation5 + $0x60] sm:$0xff] }
 0x161   : > { %496 = vperm.xlu1 %783, %v257_v29  }
 0x1ab   : > { %v324_v31 = vpop.permute.xlu1 %323  ;;  %v315_v32 = vpop.permute.xlu0 %314 }
 0x1af   : > { %v331_v34 = vpop.permute.xlu1 %330  ;;  %v326_v35 = vpop.permute.xlu0 %325 }
 0x1b0   : > { %v328_v39 = vsel %vm327_vm1, %v324_v31, %v326_v35  ;;  %v329_v40 = vsel %vm327_vm1, %v326_v35, %v324_v31  ;;  %v387_v35 = vld [vmem:[#allocation5 + $0x78] sm:$0xff] }
 0x1b1   : > { %v392_v45 = vmul.f32 %v374_v38, %v329_v40  ;;  %v393_v48 = vmul.f32 %v375_v41, %v328_v39 }
 0x1b3   : > { %v338_v36 = vpop.permute.xlu1 %337  ;;  %v333_v37 = vpop.permute.xlu0 %332 }
 0x1b4   : > { %v335_v50 = vsel %vm334_vm2, %v331_v34, %v333_v37  ;;  %v336_v61 = vsel %vm334_vm2, %v333_v37, %v331_v34  ;;  %v386_v34 = vld [vmem:[#allocation5 + $0x70] sm:$0xff] }
 0x1b5   : > { %v395_v62 = vmul.f32 %v377_v49, %v335_v50  ;;  %v394_v19 = vmul.f32 %v376_v60, %v336_v61 }
 0x1b7   : > { %v317_v46 = vpop.permute.xlu1 %316  ;;  %v340_v47 = vpop.permute.xlu0 %339 }
 0x1b8   : > { %v321_v51 = vsel %vm320_vm3, %v315_v32, %v317_v46  ;;  %v322_v52 = vsel %vm320_vm3, %v317_v46, %v315_v32  ;;  %v342_v53 = vsel %vm341_vm4, %v338_v36, %v340_v47  ;;  %v343_v56 = vsel %vm341_vm4, %v340_v47, %v338_v36  ;;  %v389_v46 = vld [vmem:[#allocation5 + $0x88] sm:$0xff] }
 0x1b9   : > { %v390_v54 = vmul.f32 %v372_v42, %v322_v52  ;;  %v397_v57 = vmul.f32 %v379_v43, %v342_v53  ;;  %v391_v58 = vmul.f32 %v373_v44, %v321_v51  ;;  %v396_v12 = vmul.f32 %v378_v55, %v343_v56 }
 0x1ba   : > { %v398_v36 = vmul.f32 %v380_v25, %v1149_v21 }
 0x1bb   : > { %v345_v63 = vpop.permute.xlu1 %344  ;;  %v347_v4 = vpop.permute.xlu0 %346  ;;  %v409_v8 = vpack.c.bf16 %v393_v48, %v391_v58  ;;  %v408_v9 = vpack.c.bf16 %v392_v45, %v390_v54  ;;  %v411_v18 = vpack.c.bf16 %v397_v57, %v395_v62  ;;  %v410_v27 = vpack.c.bf16 %v396_v12, %v394_v19  ;;  %v388_v45 = vld [vmem:[#allocation5 + $0x80] sm:$0xff]  ;;  %v249_v19 = vld [vmem:[%s1300_s1 + $0x28] sm:$0xff] }
 0x1bc   : > { %v350_v13 = vsel %vm348_vm5, %v347_v4, %v345_v63  ;;  %v349_v16 = vsel %vm348_vm5, %v345_v63, %v347_v4  ;;  %v245_v57 = vpack.c.bf16 %v244_v33, %v244_v33 }
 0x1bd   : > { %v401_v17 = vmul.f32 %v383_v59, %v350_v13  ;;  %434 = vmatprep.subr.bf16.mxu1 %v409_v8  ;;  %v400_v26 = vmul.f32 %v382_v15, %v349_v16  ;;  %v246_v13 = vld [vmem:[%s1300_s1 + $0x10] sm:$0xff] }
 0x1be   : > { %435 = vmatpush1.bf16.msra.mxu1 %v408_v9 }
 0x1bf   : > { %v352_v20 = vpop.permute.xlu1 %351  ;;  %436 = vmatprep.subr.bf16.mxu1 %v411_v18  ;;  %v354_v22 = vpop.permute.xlu0 %353  ;;  %v413_v29 = vpack.c.bf16 %v401_v17, %v399_v23  ;;  %v412_v40 = vpack.c.bf16 %v400_v26, %v398_v36  ;;  %v250_v17 = vpack.c.bf16 %v247_v14, %v246_v13  ;;  %v248_v18 = vld [vmem:[%s1300_s1 + $0x20] sm:$0xff] }
 0x1c0   : > { %v356_v31 = vsel %vm355_vm6, %v352_v20, %v354_v22  ;;  %v357_v32 = vsel %vm355_vm6, %v354_v22, %v352_v20  ;;  %v251_v20 = vpack.c.bf16 %v249_v19, %v248_v18 }
 0x1c1   : > { %v402_v41 = vmul.f32 %v384_v28, %v356_v31  ;;  %v403_v42 = vmul.f32 %v385_v30, %v357_v32 }
 0x1c2   : > { %437 = vmatpush1.bf16.msra.mxu1 %v410_v27 }
 0x1c3   : > { %v359_v37 = vpop.permute.xlu1 %358  ;;  %438 = vmatprep.subr.bf16.mxu1 %v413_v29  ;;  %v361_v38 = vpop.permute.xlu0 %360 }
 0x1c4   : > { %v363_v39 = vsel %vm362_vm7, %v359_v37, %v361_v38  ;;  %v364_v24 = vsel %vm362_vm7, %v361_v38, %v359_v37 }
 0x1c5   : > { %v404_v43 = vmul.f32 %v386_v34, %v363_v39  ;;  %v405_v44 = vmul.f32 %v387_v35, %v364_v24 }
 0x1c6   : > { %439 = vmatpush1.bf16.msra.mxu1 %v412_v40 }
 0x1c7   : > { %v366_v47 = vpop.permute.xlu1 %365  ;;  %v368_v48 = vpop.permute.xlu0 %367  ;;  %v415_v49 = vpack.c.bf16 %v405_v44, %v403_v42  ;;  %v414_v50 = vpack.c.bf16 %v404_v43, %v402_v41 }
 0x1c8   : > { %v370_v21 = vsel %vm369_vm8, %v366_v47, %v368_v48  ;;  %v371_v51 = vsel %vm369_vm8, %v368_v48, %v366_v47 }
 0x1c9   : > { %v406_v52 = vmul.f32 %v388_v45, %v370_v21  ;;  %v407_v53 = vmul.f32 %v389_v46, %v371_v51  ;;  %440 = vmatprep.subr.bf16.mxu1 %v415_v49 }
 0x1ca   : > { %441 = vmatpush1.bf16.msra.mxu1 %v414_v50 }
 0x1cb   : > { %v416_v54 = vpack.c.bf16 %v406_v52, %v406_v52  ;;  %v417_v55 = vpack.c.bf16 %v407_v53, %v407_v53 }
 0x1cd   : > { %698 = vmatprep.subr.msk.bf16.mxu1 %vm427_vm9, %v417_v55  ;;  %v429_v56 = vsel %vm427_vm9, %v416_v54, 0 }
 0x1ce   : > { %443 = vmatpush1.bf16.msra.mxu1 %v429_v56 }
 0x1d1   : > { %699 = vmatmul.mubr.msk.bf16.vlgmr.msra.gmra.mrb[0].mxu1 %vm423_vm10, %v245_v57 }
 0x1d8   : > { %v421_v58 = vpop.permute.xlu1 %420  ;;  %v482_v22 = vpop.permute.xlu0 %481 }
 0x1dc   : > { %v487_v27 = vpop.permute.xlu1 %486  ;;  %v492_v39 = vpop.permute.xlu0 %491 }
 0x1e0   : > { %v497_v41 = vpop.permute.xlu1 %496 }
 0x2a4   : > { %v468_v59 = vpop.f32.mrb[0].mxu1 }
 0x2a5   : > { %v469_v60 = vadd.f32 %v468_v59, %v421_v58  ;;  %v470_v61 = vpop.f32.mrb[1].mxu1 }
 0x2a6   : > { %v471_v62 = vadd.f32 %v470_v61, %v421_v58  ;;  %v472_v63 = vpop.f32.mrb[2].mxu1 }
 0x2a7   : > { %v475_v4 = vmax.f32 %v469_v60, 0.0  ;;  %v473_v8 = vpop.f32.mrb[3].mxu1 }
 0x2a8   : > { %v476_v9 = vmax.f32 %v471_v62, 0.0 }
 0x2a9   : > { %v477_v12 = vpack.c.bf16 %v475_v4, %v475_v4 }
 0x2aa   : > { %v478_v15 = vpack.c.bf16 %v476_v9, %v476_v9 }
 0x2ab   : > { %v507_v16 = vsel %vm427_vm9, %v477_v12, 0 }
 0x2ac   : > { %700 = vmatprep.subr.msk.bf16.mxu0 %vm427_vm9, %v478_v15 }
 0x2ad   : > { %513 = vmatpush1.bf16.msra.mxu0 %v507_v16 }
 0x2b0   : > { %701 = vmatmul.mubr.msk.bf16.vlgmr.msra.gmra.mrb[4].mxu0 %vm499_vm11, %v250_v17 }
 0x2b1   : > { %554 = vmatprep.mubr.bf16.mxu0 %v919_v0 }
 0x2b8   : > { %702 = vmatmul.mubr.msk.bf16.gmra.mrb[8].mxu0 %vm499_vm11, %v251_v20 }
 0x383   : > { %v546_v23 = vpop.f32.mrb[4].mxu0 }
 0x384   : > { %v547_v25 = vadd.f32 %v546_v23, %v482_v22  ;;  %v548_v26 = vpop.f32.mrb[5].mxu0 }
 0x385   : > { %v549_v28 = vadd.f32 %v548_v26, %v482_v22  ;;  %v550_v29 = vpop.f32.mrb[6].mxu0 }
 0x386   : > { %v565_v0 = vadd.f32 %v547_v25, %v1122_v3  ;;  %v551_v30 = vadd.f32 %v550_v29, %v487_v27  ;;  %v552_v31 = vpop.f32.mrb[7].mxu0 }
 0x387   : > { %v566_v32 = vadd.f32 %v549_v28, %v1118_v1  ;;  %v553_v34 = vadd.f32 %v552_v31, %v487_v27 }
 0x388   : > { %v573_v35 = vmax.f32 %v565_v0, 0.0  ;;  %v567_v36 = vadd.f32 %v551_v30, %v1126_v5 }
 0x389   : > { %v574_v37 = vmax.f32 %v566_v32, 0.0  ;;  %v568_v38 = vadd.f32 %v553_v34, %v1120_v2 }
 0x38a   : > { %581 = vst [vmem:[%s1234_s22] sm:$0xff] %v573_v35  ;;  %v575_v3 = vmax.f32 %v567_v36, 0.0 }
 0x38b   : > { %582 = vst [vmem:[%s1234_s22 + $0x8] sm:$0xff] %v574_v37  ;;  %v576_v1 = vmax.f32 %v568_v38, 0.0  ;;  %v556_v24 = vpop.f32.mrb[8].mxu0 }
 0x38c   : > { %583 = vst [vmem:[%s1234_s22 + $0x10] sm:$0xff] %v575_v3  ;;  %v557_v5 = vadd.f32 %v556_v24, %v492_v39  ;;  %v558_v40 = vpop.f32.mrb[9].mxu0 }
 0x38d   : > { %584 = vst [vmem:[%s1234_s22 + $0x18] sm:$0xff] %v576_v1  ;;  %v559_v2 = vadd.f32 %v558_v40, %v492_v39  ;;  %v560_v42 = vpop.f32.mrb[10].mxu0 }
 0x38e   : > { %v569_v43 = vadd.f32 %v557_v5, %v1136_v10  ;;  %v561_v44 = vadd.f32 %v560_v42, %v497_v41  ;;  %v562_v45 = vpop.f32.mrb[11].mxu0 }
 0x38f   : > { %v570_v46 = vadd.f32 %v559_v2, %v1128_v6  ;;  %v563_v47 = vadd.f32 %v562_v45, %v497_v41 }
 0x390   : > { %v577_v48 = vmax.f32 %v569_v43, 0.0  ;;  %v571_v49 = vadd.f32 %v561_v44, %v1138_v11 }
 0x391   : > { %v578_v50 = vmax.f32 %v570_v46, 0.0  ;;  %v572_v10 = vadd.f32 %v563_v47, %v1130_v7 }
 0x392   : > { %585 = vst [vmem:[%s1234_s22 + $0x20] sm:$0xff] %v577_v48  ;;  %v579_v21 = vmax.f32 %v571_v49, 0.0 }
 0x393   : > { %586 = vst [vmem:[%s1234_s22 + $0x28] sm:$0xff] %v578_v50  ;;  %v580_v6 = vmax.f32 %v572_v10, 0.0 }
 0x394   : > { %587 = vst [vmem:[%s1234_s22 + $0x30] sm:$0xff] %v579_v21 }
 0x395   : > { %588 = vst [vmem:[%s1234_s22 + $0x38] sm:$0xff] %v580_v6 }
 0x396   : > { %855 = shalt.err (!%p852_p11)
}
 0x397   : > { %s856_s30 = scalar_lea.hbm %s1252_s14, 1024  ;;  %s860_s9 = scalar_lea.hbm %s1303_s4, 2048 }
 0x398   : > { %p857_p13 = scmp.ne.s32.totalorder %s1252_s14, %s856_s30  ;;  %p861_p12 = scmp.lt.u32.totalorder %s1252_s14, %s1303_s4 }
 0x399   : > { %p862_p3 = scmp.lt.u32.totalorder %s860_s9, %s856_s30  ;;  %p864_p8 = scmp.lt.u32.totalorder %s856_s30, %s1252_s14 }
 0x39a   : > { %p858_p2 = pnand %p857_p13, %p1321_p9 }
 0x39b   : > { %p863_p7 = por %p862_p3, %p861_p12 }
 0x39c   : > { %p859_p6 = pneg %p858_p2 }
 0x39d   : > { %p865_p10 = por %p864_p8, %p863_p7 }
 0x39f   : > { %p866_p1 = pnand %p865_p10, %p859_p6 }
 0x3a1   : > { %869 = shalt.err (!%p866_p1)
}
 0x3a2   : > { %s929_s22 = smov 256   ;;  %s930_s23 = smov 512  }
 0x3a3   : > { %s931_s6 = smov 16  }
 0x3a4   : > { %716 = dma.vmem_to_hbm [thread:$0]  (%p1321_p9), %s1245_s11, 1024, %s1252_s14, %s590_s19, %s929_s22, %s930_s23, %s931_s6  }
 0x3a5 PF: > { %s618_s25 = sand.u32 1, %s900_s15   ;;  %p1322_p4 = scmp.ne.s32.totalorder %s1311_s28, 0 }
 0x3a6   : > { %p1323_p0 = scmp.ge.s32.totalorder %s912_s18, 2  ;;  %s619_s13 = scalar_lea.sflag [#allocation4], %s618_s25 }
 0x3a8   : > { %p727_p5 = pnand %p1323_p0, %p1322_p4 }
 0x3aa   : > { %895 = dma.done.wait (!%p727_p5), %s619_s13, 1024  }
 0x3ab   : > { %897 = vsyncadd (!%p727_p5), %s619_s13, 4294966272  ;;  %p18_p11 = scmp.ge.s32.totalorder %s982_s21, 4   ;;  %s1324_s15 = smov %s904_s16 }
 0x3ac   : > { %s1325_s16 = smov %s908_s17  ;;  %s1326_s17 = smov %s994_s24 }
 0x3ad   : > { %s1327_s18 = smov %s982_s21  ;;  %20 = sbr.rel (!%p18_p11) target bundleno = 6 (0x6), region = 85 }
 0x3b4   :  { %624 = vsyncpa [#allocation3], 1 }
 0x3b5   :  { %626 = vsyncpa [#allocation3 + $0x1], 1 }
 0x3b6   :  { %627 = vsyncpa [#allocation6], 1 }
 0x3b7   :  { %628 = vsyncpa [#allocation4], 1 }
 0x3b8   :  { %630 = vsyncpa [#allocation4 + $0x1], 1 }

</bundles_post_ra>
